<compile_context>
chip_gen: v6e
topology: v6e:2x2x1
jax: 0.10.0
libtpu: 0.0.40
codegen_flags: <defaults>
</compile_context>

<pallas_src>
import jax
import jax.numpy as jnp
from jax.experimental import pallas as pl
from jax.experimental.pallas import tpu as pltpu

KH = KW = 3  # 'normal' type: kernel=3, stride=1, padding=1


def _conv_stats_kernel(x_ref, b_ref, y_ref, stats_ref):
    """3x3 conv of one image as 3 banded matmuls + per-image partial BN stats.

    x_ref:     (1, H+2, (W+2)*Cin)     bf16  zero-padded image, (w, c) flattened on lanes
    b_ref:     (KH, (W+2)*Cin, W*Cout) bf16  banded (block-Toeplitz) weights, one per kh
    y_ref:     (H, W*Cout)             f32   lane-dense conv output rows of this image
    stats_ref: (1, 2, W*Cout)          f32   per-image [sum; sum_sq] per (w, cout) column
    """
    _, h_pad, _ = x_ref.shape
    H = h_pad - (KH - 1)
    WC = y_ref.shape[-1]

    xv = x_ref[0].astype(jnp.float32)          # one aligned full-block load, widen once

    acc = jnp.zeros((H, WC), jnp.float32)
    for kh in range(KH):                       # 3 MXU matmuls: K=(W+2)*Cin, N=W*Cout
        a = xv[kh:kh + H, :].astype(jnp.bfloat16)
        acc += jnp.dot(a, b_ref[kh], preferred_element_type=jnp.float32)

    y_ref[...] = acc                           # unmasked full-lane (128-wide) stores

    # Partial BN statistics; the (2, W*Cout) -> (2, Cout) fold happens in the glue.
    stats_ref[0, 0:1, :] = jnp.sum(acc, axis=0, keepdims=True)
    stats_ref[0, 1:2, :] = jnp.sum(acc * acc, axis=0, keepdims=True)


def _bn_relu_kernel(y_ref, scale_ref, bias_ref, o_ref):
    # y_ref/o_ref: (rows, W*Cout) f32; scale_ref/bias_ref: (1, W*Cout) f32 (channel-tiled)
    o_ref[...] = jnp.maximum(
        y_ref[...] * scale_ref[...] + bias_ref[...], 0.0).astype(o_ref.dtype)


def _largest_divisor_leq(n, cap):
    cap = max(1, min(n, cap))
    for d in range(cap, 0, -1):
        if n % d == 0:
            return d
    return 1


def _banded_conv_weights(w_oihw, W):
    """Fold the (kw, cin) taps of a 3x3/s1/p1 conv into banded matmul weights.

    Returns b of shape (KH, (W+2)*Cin, W*Cout) with
        b[kh, (w+kw)*Cin + c, w*Cout + o] = w_oihw[o, c, kh, kw]
    so that  y[h, w*Cout + o] = sum_kh  x_pad_flat[h+kh, :] @ b[kh].
    """
    Cout, Cin, _, _ = w_oihw.shape
    wt = jnp.transpose(w_oihw, (2, 3, 1, 0))                       # (KH, KW, Cin, Cout)
    w_pos = jnp.arange(W)
    rows = ((w_pos[:, None, None] + jnp.arange(KW)[None, :, None]) * Cin
            + jnp.arange(Cin)[None, None, :])                      # (W, KW, Cin)
    cols = w_pos[:, None] * Cout + jnp.arange(Cout)[None, :]       # (W, Cout)
    b = jnp.zeros((KH, (W + 2) * Cin, W * Cout), jnp.float32)
    b = b.at[:, rows[:, :, :, None], cols[:, None, None, :]].set(wt[:, None, :, :, :])
    return b


@jax.jit
def conv_bn_forward(x_nchw, w_oihw, gamma, beta, eps=1e-5):
    N, Cin, H, W = x_nchw.shape
    Cout = w_oihw.shape[0]
    WC = W * Cout

    # --- layout plumbing (fuses into one XLA pass): NCHW -> padded, lane-flat NHWC, bf16
    x = jnp.transpose(x_nchw, (0, 2, 3, 1))                        # (N, H, W, Cin)
    x = jnp.pad(x, ((0, 0), (1, 1), (1, 1), (0, 0)))               # conv padding = 1
    x = x.reshape(N, H + 2, (W + 2) * Cin).astype(jnp.bfloat16)

    # --- weight preprocessing (tiny; in real use precompute once per layer)
    b = _banded_conv_weights(w_oihw, W).astype(jnp.bfloat16)       # (KH, (W+2)*Cin, WC)

    # --- pass 1: conv + per-image partial BN stats ("parallel" over the batch)
    y_flat, stats = pl.pallas_call(
        _conv_stats_kernel,
        out_shape=(jax.ShapeDtypeStruct((N * H, WC), jnp.float32),
                   jax.ShapeDtypeStruct((N, 2, WC), jnp.float32)),
        grid_spec=pltpu.PrefetchScalarGridSpec(
            num_scalar_prefetch=0,
            grid=(N,),
            in_specs=[pl.BlockSpec((1, H + 2, (W + 2) * Cin), lambda n: (n, 0, 0)),
                      pl.BlockSpec((KH, (W + 2) * Cin, WC), lambda n: (0, 0, 0))],
            out_specs=[pl.BlockSpec((H, WC), lambda n: (n, 0)),
                       pl.BlockSpec((1, 2, WC), lambda n: (n, 0, 0))]),
        compiler_params=pltpu.CompilerParams(
            dimension_semantics=("parallel",)),
    )(x, b)

    # --- tiny per-channel glue: training-mode BN (biased variance), folded affine
    count = N * H * W
    tot = jnp.sum(stats, axis=0).reshape(2, W, Cout).sum(axis=1)   # (2, Cout)
    mean = tot[0] / count
    var = jnp.maximum(tot[1] / count - mean * mean, 0.0)
    scale = gamma / jnp.sqrt(var + eps)
    bias = beta - mean * scale
    scale_t = jnp.tile(scale, W).reshape(1, WC).astype(jnp.float32)
    bias_t = jnp.tile(bias, W).reshape(1, WC).astype(jnp.float32)

    # --- pass 2: lane-dense fused BN affine + ReLU, written in place over y (aliased)
    ipb = _largest_divisor_leq(N, max(1, 1024 // H))               # images per row-block
    rows = ipb * H
    out_flat = pl.pallas_call(
        _bn_relu_kernel,
        out_shape=jax.ShapeDtypeStruct((N * H, WC), jnp.float32),
        grid_spec=pltpu.PrefetchScalarGridSpec(
            num_scalar_prefetch=0,
            grid=(N // ipb,),
            in_specs=[pl.BlockSpec((rows, WC), lambda i: (i, 0)),
                      pl.BlockSpec((1, WC), lambda i: (0, 0)),
                      pl.BlockSpec((1, WC), lambda i: (0, 0))],
            out_specs=pl.BlockSpec((rows, WC), lambda i: (i, 0))),
        compiler_params=pltpu.CompilerParams(
            dimension_semantics=("parallel",)),
        input_output_aliases={0: 0},
    )(y_flat, scale_t, bias_t)

    out = out_flat.reshape(N, H, W, Cout)
    return jnp.transpose(out, (0, 3, 1, 2))                        # back to NCHW


def _reference(x_nchw, w_oihw, gamma, beta, eps=1e-5):
    # Pure-JAX reference of the same forward (training-mode BN).  Inputs are pre-rounded
    # to bf16 to match the kernel's bf16 MXU inputs (accumulation is f32 in both).
    x = jnp.transpose(x_nchw, (0, 2, 3, 1)).astype(jnp.bfloat16).astype(jnp.float32)
    w = jnp.transpose(w_oihw, (2, 3, 1, 0)).astype(jnp.bfloat16).astype(jnp.float32)
    y = jax.lax.conv_general_dilated(
        x, w, window_strides=(1, 1), padding='SAME',
        dimension_numbers=('NHWC', 'HWIO', 'NHWC'),
        precision=jax.lax.Precision.HIGHEST)
    mean = y.mean(axis=(0, 1, 2))
    var = ((y - mean) ** 2).mean(axis=(0, 1, 2))
    out = jnp.maximum((y - mean) / jnp.sqrt(var + eps) * gamma + beta, 0.0)
    return jnp.transpose(out, (0, 3, 1, 2))


if __name__ == "__main__":
    # ConvBN(nIn=4, nOut=8, type='normal', bottleneck=False), NCHW input (2, 4, 16, 16).
    N, Cin, H, W, Cout = 2, 4, 16, 16, 8
    key = jax.random.PRNGKey(0)
    kx, kw, kg, kb = jax.random.split(key, 4)

    x = jax.random.normal(kx, (N, Cin, H, W), jnp.float32)
    conv_w = jax.random.normal(kw, (Cout, Cin, KH, KW), jnp.float32) * 0.1
    gamma = jax.random.uniform(kg, (Cout,), jnp.float32, 0.5, 1.5)
    beta = jax.random.normal(kb, (Cout,), jnp.float32) * 0.1

    out = conv_bn_forward(x, conv_w, gamma, beta)
    out = jax.block_until_ready(out)

    ref = _reference(x, conv_w, gamma, beta)
    assert out.shape == (N, Cout, H, W)
    assert jnp.allclose(out, ref, atol=2e-3, rtol=2e-3), "mismatch vs reference"

    print("KERNEL_OK")
</pallas_src>

<mosaic_0001>
module attributes {stable_mosaic.version = 11 : i64} {
  func.func @_conv_stats_kernel(%arg0: i32, %arg1: memref<1x18x72xbf16, #tpu.memory_space<vmem>>, %arg2: memref<3x72x128xbf16, #tpu.memory_space<vmem>>, %arg3: memref<16x128xf32, #tpu.memory_space<vmem>>, %arg4: memref<1x2x128xf32, #tpu.memory_space<vmem>>) attributes {dimension_semantics = [#tpu.dimension_semantics<parallel>], iteration_bounds = array<i64: 2>, scalar_prefetch = 0 : i64, scratch_operands = 0 : i64, tpu.core_type = #tpu.core_type<tc>, window_params = [{transform_indices = @transform_0, window_bounds = array<i64: 1, 18, 72>}, {pipeline_mode = #tpu.pipeline_mode<synchronous>, transform_indices = @transform_1, window_bounds = array<i64: 3, 72, 128>}, {transform_indices = @transform_2, window_bounds = array<i64: 16, 128>}, {transform_indices = @transform_3, window_bounds = array<i64: 1, 2, 128>}]} {
    %c0 = arith.constant 0 : index
    %c0_0 = arith.constant 0 : index
    %c0_1 = arith.constant 0 : index
    %0 = vector.load %arg1[%c0, %c0_0, %c0_1] : memref<1x18x72xbf16, #tpu.memory_space<vmem>>, vector<1x18x72xbf16>
    %1 = vector.shape_cast %0 : vector<1x18x72xbf16> to vector<18x72xbf16>
    %2 = arith.extf %1 : vector<18x72xbf16> to vector<18x72xf32>
    %cst = arith.constant 0.000000e+00 : f32
    %3 = vector.broadcast %cst : f32 to vector<16x128xf32>
    %4 = vector.extract_strided_slice %2 {offsets = [0, 0], sizes = [16, 72], strides = [1, 1]} : vector<18x72xf32> to vector<16x72xf32>
    %5 = arith.truncf %4 : vector<16x72xf32> to vector<16x72xbf16>
    %c0_2 = arith.constant 0 : index
    %c0_3 = arith.constant 0 : index
    %c0_4 = arith.constant 0 : index
    %6 = vector.load %arg2[%c0_2, %c0_3, %c0_4] : memref<3x72x128xbf16, #tpu.memory_space<vmem>>, vector<1x72x128xbf16>
    %7 = vector.shape_cast %6 : vector<1x72x128xbf16> to vector<72x128xbf16>
    %cst_5 = arith.constant dense<0.000000e+00> : vector<16x128xf32>
    %8 = tpu.matmul %5, %7, %cst_5 {dimension_numbers = #tpu.dot_dimension_numbers<[1], [0], [0], [1], [0, 0, 1, 1], [], []>} : vector<16x72xbf16>, vector<72x128xbf16>, vector<16x128xf32> -> vector<16x128xf32>
    %9 = arith.addf %3, %8 : vector<16x128xf32>
    %10 = vector.extract_strided_slice %2 {offsets = [1, 0], sizes = [16, 72], strides = [1, 1]} : vector<18x72xf32> to vector<16x72xf32>
    %11 = arith.truncf %10 : vector<16x72xf32> to vector<16x72xbf16>
    %c1 = arith.constant 1 : index
    %c0_6 = arith.constant 0 : index
    %c0_7 = arith.constant 0 : index
    %12 = vector.load %arg2[%c1, %c0_6, %c0_7] : memref<3x72x128xbf16, #tpu.memory_space<vmem>>, vector<1x72x128xbf16>
    %13 = vector.shape_cast %12 : vector<1x72x128xbf16> to vector<72x128xbf16>
    %cst_8 = arith.constant dense<0.000000e+00> : vector<16x128xf32>
    %14 = tpu.matmul %11, %13, %cst_8 {dimension_numbers = #tpu.dot_dimension_numbers<[1], [0], [0], [1], [0, 0, 1, 1], [], []>} : vector<16x72xbf16>, vector<72x128xbf16>, vector<16x128xf32> -> vector<16x128xf32>
    %15 = arith.addf %9, %14 : vector<16x128xf32>
    %16 = vector.extract_strided_slice %2 {offsets = [2, 0], sizes = [16, 72], strides = [1, 1]} : vector<18x72xf32> to vector<16x72xf32>
    %17 = arith.truncf %16 : vector<16x72xf32> to vector<16x72xbf16>
    %c2 = arith.constant 2 : index
    %c0_9 = arith.constant 0 : index
    %c0_10 = arith.constant 0 : index
    %18 = vector.load %arg2[%c2, %c0_9, %c0_10] : memref<3x72x128xbf16, #tpu.memory_space<vmem>>, vector<1x72x128xbf16>
    %19 = vector.shape_cast %18 : vector<1x72x128xbf16> to vector<72x128xbf16>
    %cst_11 = arith.constant dense<0.000000e+00> : vector<16x128xf32>
    %20 = tpu.matmul %17, %19, %cst_11 {dimension_numbers = #tpu.dot_dimension_numbers<[1], [0], [0], [1], [0, 0, 1, 1], [], []>} : vector<16x72xbf16>, vector<72x128xbf16>, vector<16x128xf32> -> vector<16x128xf32>
    %21 = arith.addf %15, %20 : vector<16x128xf32>
    %c0_12 = arith.constant 0 : index
    %c0_13 = arith.constant 0 : index
    %22 = vector.load %arg3[%c0_12, %c0_13] : memref<16x128xf32, #tpu.memory_space<vmem>>, vector<16x128xf32>
    tpu.vector_store %arg3[%c0_12, %c0_13], %21 {strides = array<i32>} : memref<16x128xf32, #tpu.memory_space<vmem>>, vector<16x128xf32>,
    %cst_14 = arith.constant dense<0.000000e+00> : vector<128xf32>
    %23 = vector.multi_reduction <add>, %21, %cst_14 [0] : vector<16x128xf32> to vector<128xf32>
    %24 = vector.shape_cast %23 : vector<128xf32> to vector<1x128xf32>
    %c0_15 = arith.constant 0 : index
    %c0_16 = arith.constant 0 : index
    %c0_17 = arith.constant 0 : index
    %25 = vector.load %arg4[%c0_15, %c0_16, %c0_17] : memref<1x2x128xf32, #tpu.memory_space<vmem>>, vector<1x1x128xf32>
    %26 = vector.shape_cast %25 : vector<1x1x128xf32> to vector<1x128xf32>
    %27 = vector.shape_cast %24 : vector<1x128xf32> to vector<1x1x128xf32>
    tpu.vector_store %arg4[%c0_15, %c0_16, %c0_17], %27 {strides = array<i32>} : memref<1x2x128xf32, #tpu.memory_space<vmem>>, vector<1x1x128xf32>,
    %28 = arith.mulf %21, %21 : vector<16x128xf32>
    %cst_18 = arith.constant dense<0.000000e+00> : vector<128xf32>
    %29 = vector.multi_reduction <add>, %28, %cst_18 [0] : vector<16x128xf32> to vector<128xf32>
    %30 = vector.shape_cast %29 : vector<128xf32> to vector<1x128xf32>
    %c0_19 = arith.constant 0 : index
    %c1_20 = arith.constant 1 : index
    %c0_21 = arith.constant 0 : index
    %31 = vector.load %arg4[%c0_19, %c1_20, %c0_21] : memref<1x2x128xf32, #tpu.memory_space<vmem>>, vector<1x1x128xf32>
    %32 = vector.shape_cast %31 : vector<1x1x128xf32> to vector<1x128xf32>
    %33 = vector.shape_cast %30 : vector<1x128xf32> to vector<1x1x128xf32>
    tpu.vector_store %arg4[%c0_19, %c1_20, %c0_21], %33 {strides = array<i32>} : memref<1x2x128xf32, #tpu.memory_space<vmem>>, vector<1x1x128xf32>,
    return
  }
  func.func @transform_0(%arg0: i32) -> (i32, i32, i32) {
    %c0_i32 = arith.constant 0 : i32
    %c0_i32_0 = arith.constant 0 : i32
    %c0_i32_1 = arith.constant 0 : i32
    return %arg0, %c0_i32, %c0_i32_0 : i32, i32, i32
  }
  func.func @transform_1(%arg0: i32) -> (i32, i32, i32) {
    %c0_i32 = arith.constant 0 : i32
    %c0_i32_0 = arith.constant 0 : i32
    %c0_i32_1 = arith.constant 0 : i32
    %c0_i32_2 = arith.constant 0 : i32
    return %c0_i32, %c0_i32_0, %c0_i32_1 : i32, i32, i32
  }
  func.func @transform_2(%arg0: i32) -> (i32, i32) {
    %c0_i32 = arith.constant 0 : i32
    %c0_i32_0 = arith.constant 0 : i32
    return %arg0, %c0_i32 : i32, i32
  }
  func.func @transform_3(%arg0: i32) -> (i32, i32, i32) {
    %c0_i32 = arith.constant 0 : i32
    %c0_i32_0 = arith.constant 0 : i32
    %c0_i32_1 = arith.constant 0 : i32
    return %arg0, %c0_i32, %c0_i32_0 : i32, i32, i32
  }
}

module attributes {stable_mosaic.version = 11 : i64} {
  func.func @_bn_relu_kernel(%arg0: i32, %arg1: memref<32x128xf32, #tpu.memory_space<vmem>>, %arg2: memref<1x128xf32, #tpu.memory_space<vmem>>, %arg3: memref<1x128xf32, #tpu.memory_space<vmem>>, %arg4: memref<32x128xf32, #tpu.memory_space<vmem>>) attributes {dimension_semantics = [#tpu.dimension_semantics<parallel>], iteration_bounds = array<i64: 1>, scalar_prefetch = 0 : i64, scratch_operands = 0 : i64, tpu.core_type = #tpu.core_type<tc>, window_params = [{transform_indices = @transform_0, window_bounds = array<i64: 32, 128>}, {pipeline_mode = #tpu.pipeline_mode<synchronous>, transform_indices = @transform_1, window_bounds = array<i64: 1, 128>}, {pipeline_mode = #tpu.pipeline_mode<synchronous>, transform_indices = @transform_2, window_bounds = array<i64: 1, 128>}, {transform_indices = @transform_3, window_bounds = array<i64: 32, 128>}]} {
    %c0 = arith.constant 0 : index
    %c0_0 = arith.constant 0 : index
    %0 = vector.load %arg1[%c0, %c0_0] : memref<32x128xf32, #tpu.memory_space<vmem>>, vector<32x128xf32>
    %c0_1 = arith.constant 0 : index
    %c0_2 = arith.constant 0 : index
    %1 = vector.load %arg2[%c0_1, %c0_2] : memref<1x128xf32, #tpu.memory_space<vmem>>, vector<1x128xf32>
    %2 = vector.broadcast %1 : vector<1x128xf32> to vector<32x128xf32>
    %3 = arith.mulf %0, %2 : vector<32x128xf32>
    %c0_3 = arith.constant 0 : index
    %c0_4 = arith.constant 0 : index
    %4 = vector.load %arg3[%c0_3, %c0_4] : memref<1x128xf32, #tpu.memory_space<vmem>>, vector<1x128xf32>
    %5 = vector.broadcast %4 : vector<1x128xf32> to vector<32x128xf32>
    %6 = arith.addf %3, %5 : vector<32x128xf32>
    %cst = arith.constant 0.000000e+00 : f32
    %7 = vector.broadcast %cst : f32 to vector<32x128xf32>
    %8 = arith.maximumf %6, %7 : vector<32x128xf32>
    %c0_5 = arith.constant 0 : index
    %c0_6 = arith.constant 0 : index
    %9 = vector.load %arg4[%c0_5, %c0_6] : memref<32x128xf32, #tpu.memory_space<vmem>>, vector<32x128xf32>
    tpu.vector_store %arg4[%c0_5, %c0_6], %8 {strides = array<i32>} : memref<32x128xf32, #tpu.memory_space<vmem>>, vector<32x128xf32>,
    return
  }
  func.func @transform_0(%arg0: i32) -> (i32, i32) {
    %c0_i32 = arith.constant 0 : i32
    %c0_i32_0 = arith.constant 0 : i32
    return %arg0, %c0_i32 : i32, i32
  }
  func.func @transform_1(%arg0: i32) -> (i32, i32) {
    %c0_i32 = arith.constant 0 : i32
    %c0_i32_0 = arith.constant 0 : i32
    %c0_i32_1 = arith.constant 0 : i32
    return %c0_i32, %c0_i32_0 : i32, i32
  }
  func.func @transform_2(%arg0: i32) -> (i32, i32) {
    %c0_i32 = arith.constant 0 : i32
    %c0_i32_0 = arith.constant 0 : i32
    %c0_i32_1 = arith.constant 0 : i32
    return %c0_i32, %c0_i32_0 : i32, i32
  }
  func.func @transform_3(%arg0: i32) -> (i32, i32) {
    %c0_i32 = arith.constant 0 : i32
    %c0_i32_0 = arith.constant 0 : i32
    return %arg0, %c0_i32 : i32, i32
  }
}

</mosaic_0001>

<bundles_post_ra>
// kernel: tile.13
= control target key start
LH: loop header
LB: loop body
LE: loop exit
PB: predicated region body
PF: predicated region fallthrough
CT: control target
= control target key end

     0   :  { %s28_s0 = inlined_call_operand.vmem [shape: f32[8], index: 0, kind: input, shape index: {}]   ;;  %s29_s1 = inlined_call_operand.vmem [shape: f32[16,8], index: 1, kind: output, shape index: {}]  }
   0x1   :  { %v4_v0 = vld [vmem:[%s28_s0] ss:$0 sm:$0xff] }
   0x2   :  { %5 = vst [vmem:[%s29_s1] sm:$0xff] %v4_v0  ;;  %8 = vst [vmem:[%s29_s1 + $0x8] sm:$0xff] %v4_v0 }

// kernel: tile.14
= control target key start
LH: loop header
LB: loop body
LE: loop exit
PB: predicated region body
PF: predicated region fallthrough
CT: control target
= control target key end

     0   :  { %s133_s10 = smov 120   ;;  %s134_s11 = smov 104   ;;  %vm3_vm0 = vcmask 64512   ;;  %vm9_vm1 = vcmask 1048512   ;;  %vm15_vm2 = vcmask 982912   ;;  %vm21_vm3 = vcmask 917312   ;;  %s209_s0 = inlined_call_operand.vmem [shape: f32[16,8], index: 0, kind: input, shape index: {}]   ;;  %s210_s1 = inlined_call_operand.vmem [shape: f32[1,128], index: 1, kind: output, shape index: {}]  }
   0x1   :  { %v103_v0 = vld [vmem:[%s209_s0 + $0xf] sm:$0x1]   ;;  %v105_v1 = vld [vmem:[%s209_s0 + $0xd] sm:$0x1]   ;;  %v104_v2 = vld [vmem:[%s209_s0 + $0xe] sm:$0x1]  }
   0x2   :  { %7 = vrot.lane.b32.xlu0 %v103_v0, %s133_s10  ;;  %19 = vrot.lane.b32.xlu1 %v105_v1, %s134_s11  ;;  %v106_v3 = vld [vmem:[%s209_s0 + $0xc] sm:$0x1]   ;;  %s135_s16 = smov 112   ;;  %s136_s17 = smov 96   ;;  %v107_v4 = vld [vmem:[%s209_s0 + $0xb] sm:$0x1]  }
   0x3   :  { %v108_v5 = vld [vmem:[%s209_s0 + $0xa] sm:$0x1]   ;;  %v2_v6 = vld [vmem:[%s209_s0] sm:$0x1]   ;;  %s137_s24 = smov 88   ;;  %s138_s25 = smov 80  }
   0x4   :  { %4 = vst.msk [vmem:[#allocation0] sm:$0x1] %vm3_vm0, %v2_v6   ;;  %v109_v7 = vld [vmem:[%s209_s0 + $0x9] sm:$0x1]   ;;  %v110_v8 = vld [vmem:[%s209_s0 + $0x8] sm:$0x1]  }
   0x5   :  { %s139_s30 = smov 72   ;;  %s140_s2 = smov 64   ;;  %v111_v9 = vld [vmem:[%s209_s0 + $0x7] sm:$0x1]   ;;  %v112_v10 = vld [vmem:[%s209_s0 + $0x6] sm:$0x1]  }
   0x6   :  { %13 = vrot.lane.b32.xlu0 %v104_v2, %s135_s16  ;;  %25 = vrot.lane.b32.xlu1 %v106_v3, %s136_s17  ;;  %s141_s7 = smov 56   ;;  %s142_s8 = smov 48   ;;  %v113_v11 = vld [vmem:[%s209_s0 + $0x5] sm:$0x1]   ;;  %v114_v12 = vld [vmem:[%s209_s0 + $0x4] sm:$0x1]  }
   0x7   :  { %s143_s13 = smov 40   ;;  %s144_s14 = smov 32   ;;  %v115_v13 = vld [vmem:[%s209_s0 + $0x3] sm:$0x1]   ;;  %v116_v14 = vld [vmem:[%s209_s0 + $0x2] sm:$0x1]  }
   0x8   :  { %s145_s19 = smov 24   ;;  %s146_s20 = smov 16   ;;  %v117_v15 = vld [vmem:[%s209_s0 + $0x1] sm:$0x1]   ;;  %vm27_vm4 = vcmask 851712   ;;  %vm33_vm5 = vcmask 786112  }
   0x9   :  { %s147_s0 = smov 8   ;;  %vm39_vm6 = vcmask 720512   ;;  %vm45_vm7 = vcmask 654912   ;;  %vm51_vm8 = vcmask 589312   ;;  %vm57_vm9 = vcmask 523712  }
   0xa   :  { %31 = vrot.lane.b32.xlu0 %v107_v4, %s137_s24  ;;  %37 = vrot.lane.b32.xlu1 %v108_v5, %s138_s25  ;;  %vm63_vm10 = vcmask 458112   ;;  %vm69_vm11 = vcmask 392512   ;;  %vm75_vm12 = vcmask 326912   ;;  %vm81_vm13 = vcmask 261312  }
   0xb   :  { %vm87_vm14 = vcmask 195712   ;;  %vm93_vm15 = vcmask 130112  }
   0xe   :  { %43 = vrot.lane.b32.xlu0 %v109_v7, %s139_s30  ;;  %49 = vrot.lane.b32.xlu1 %v110_v8, %s140_s2 }
  0x12   :  { %55 = vrot.lane.b32.xlu0 %v111_v9, %s141_s7  ;;  %61 = vrot.lane.b32.xlu1 %v112_v10, %s142_s8 }
  0x16   :  { %67 = vrot.lane.b32.xlu0 %v113_v11, %s143_s13  ;;  %73 = vrot.lane.b32.xlu1 %v114_v12, %s144_s14 }
  0x1a   :  { %79 = vrot.lane.b32.xlu0 %v115_v13, %s145_s19  ;;  %85 = vrot.lane.b32.xlu1 %v116_v14, %s146_s20 }
  0x1e   :  { %91 = vrot.lane.b32.xlu0 %v117_v15, %s147_s0 }
  0x74   :  { %v8_v16 = vpop.permute.xlu0 %7   ;;  %v20_v17 = vpop.permute.xlu1 %19  }
  0x75   :  { %10 = vst.msk [vmem:[#allocation0] sm:$0x1] %vm9_vm1, %v8_v16  }
  0x78   :  { %v14_v18 = vpop.permute.xlu0 %13   ;;  %v26_v19 = vpop.permute.xlu1 %25  }
  0x79   :  { %16 = vst.msk [vmem:[#allocation0] sm:$0x1] %vm15_vm2, %v14_v18  }
  0x7a   :  { %22 = vst.msk [vmem:[#allocation0] sm:$0x1] %vm21_vm3, %v20_v17  }
  0x7b   :  { %28 = vst.msk [vmem:[#allocation0] sm:$0x1] %vm27_vm4, %v26_v19  }
  0x7c   :  { %v32_v20 = vpop.permute.xlu0 %31   ;;  %v38_v21 = vpop.permute.xlu1 %37  }
  0x7d   :  { %34 = vst.msk [vmem:[#allocation0] sm:$0x1] %vm33_vm5, %v32_v20  }
  0x7e   :  { %40 = vst.msk [vmem:[#allocation0] sm:$0x1] %vm39_vm6, %v38_v21  }
  0x80   :  { %v44_v22 = vpop.permute.xlu0 %43   ;;  %v50_v23 = vpop.permute.xlu1 %49  }
  0x81   :  { %46 = vst.msk [vmem:[#allocation0] sm:$0x1] %vm45_vm7, %v44_v22  }
  0x82   :  { %52 = vst.msk [vmem:[#allocation0] sm:$0x1] %vm51_vm8, %v50_v23  }
  0x84   :  { %v56_v24 = vpop.permute.xlu0 %55   ;;  %v62_v25 = vpop.permute.xlu1 %61  }
  0x85   :  { %58 = vst.msk [vmem:[#allocation0] sm:$0x1] %vm57_vm9, %v56_v24  }
  0x86   :  { %64 = vst.msk [vmem:[#allocation0] sm:$0x1] %vm63_vm10, %v62_v25  }
  0x88   :  { %v68_v26 = vpop.permute.xlu0 %67   ;;  %v74_v27 = vpop.permute.xlu1 %73  }
  0x89   :  { %70 = vst.msk [vmem:[#allocation0] sm:$0x1] %vm69_vm11, %v68_v26  }
  0x8a   :  { %76 = vst.msk [vmem:[#allocation0] sm:$0x1] %vm75_vm12, %v74_v27  }
  0x8c   :  { %v80_v28 = vpop.permute.xlu0 %79   ;;  %v86_v29 = vpop.permute.xlu1 %85  }
  0x8d   :  { %82 = vst.msk [vmem:[#allocation0] sm:$0x1] %vm81_vm13, %v80_v28  }
  0x8e   :  { %88 = vst.msk [vmem:[#allocation0] sm:$0x1] %vm87_vm14, %v86_v29  }
  0x90   :  { %v92_v30 = vpop.permute.xlu0 %91  }
  0x91   :  { %94 = vst.msk [vmem:[#allocation0] sm:$0x1] %vm93_vm15, %v92_v30  }
  0x98   :  { %v99_v31 = vld [vmem:[#allocation0] sm:$0x1] }
  0x99   :  { %102 = vst [vmem:[%s210_s1] sm:$0x1] %v99_v31 }

// kernel: conv_bn_forward.3
= control target key start
LH: loop header
LB: loop body
LE: loop exit
PB: predicated region body
PF: predicated region fallthrough
CT: control target
= control target key end

     0   :  { %s104_s0 = inlined_call_operand.vmem [shape: f32[32,128], index: 0, kind: input, shape index: {}, may-alias: {0,3}]   ;;  %s105_s1 = inlined_call_operand.vmem [shape: f32[1,128], index: 1, kind: input, shape index: {}]   ;;  %s106_s2 = inlined_call_operand.vmem [shape: f32[1,128], index: 2, kind: input, shape index: {}]   ;;  %s107_s3 = inlined_call_operand.vmem [shape: f32[32,128], index: 3, kind: output, shape index: {}, may-alias: {0,3}]  }
   0x1   :  { %v14_v0 = vld [vmem:[%s104_s0] sm:$0xff]  ;;  %v15_v4 = vld [vmem:[%s104_s0 + $0x8] sm:$0xff]  ;;  %v16_v5 = vld [vmem:[%s104_s0 + $0x10] sm:$0xff] }
   0x2   :  { %v52_v1 = vld [vmem:[%s105_s1] ss:$0 sm:$0xff]  ;;  %v17_v6 = vld [vmem:[%s104_s0 + $0x18] sm:$0xff] }
   0x3   :  { %v53_v2 = vld [vmem:[%s106_s2] ss:$0 sm:$0xff]  ;;  %v25_v3 = vmul.f32 %v52_v1, %v14_v0  ;;  %v26_v7 = vmul.f32 %v52_v1, %v15_v4  ;;  %v27_v8 = vmul.f32 %v52_v1, %v16_v5  ;;  %v28_v9 = vmul.f32 %v52_v1, %v17_v6 }
   0x5   :  { %v36_v10 = vadd.f32 %v53_v2, %v25_v3  ;;  %v37_v11 = vadd.f32 %v53_v2, %v26_v7  ;;  %v38_v12 = vadd.f32 %v53_v2, %v27_v8  ;;  %v39_v13 = vadd.f32 %v53_v2, %v28_v9 }
   0x7   :  { %v40_v14 = vmax.f32 %v36_v10, 0.0  ;;  %v41_v15 = vmax.f32 %v37_v11, 0.0  ;;  %v42_v16 = vmax.f32 %v38_v12, 0.0  ;;  %v43_v17 = vmax.f32 %v39_v13, 0.0 }
   0x9   :  { %44 = vst [vmem:[%s107_s3] sm:$0xff] %v40_v14  ;;  %45 = vst [vmem:[%s107_s3 + $0x8] sm:$0xff] %v41_v15 }
   0xa   :  { %46 = vst [vmem:[%s107_s3 + $0x10] sm:$0xff] %v42_v16  ;;  %47 = vst [vmem:[%s107_s3 + $0x18] sm:$0xff] %v43_v17 }

// kernel: conv_bn_forward.2
= control target key start
LH: loop header
LB: loop body
LE: loop exit
PB: predicated region body
PF: predicated region fallthrough
CT: control target
= control target key end

     0   :  { %s739_s12 = smov 0   ;;  %s840_s0 = inlined_call_operand.vmem [shape: bf16[2,18,72], index: 0, kind: input, shape index: {}]   ;;  %s841_s1 = inlined_call_operand.vmem [shape: bf16[3,72,128], index: 1, kind: input, shape index: {}]   ;;  %s842_s2 = inlined_call_operand.vmem [shape: f32[32,128], index: 2, kind: output, shape index: {0}]   ;;  %s843_s3 = inlined_call_operand.vmem [shape: f32[2,2,128], index: 3, kind: output, shape index: {1}]  }
   0x1 LB: > { %s745_s13 = sadd.s32 4294967295, %s715_s12   ;;  %p576_p0 = scmp.ge.s32.totalorder %s715_s12, 1  ;;  %s715_s12 = sphi %s739_s12, %s14_s12  }
   0x2   : > { %p140_p1 = scmp.lt.s32.totalorder %s715_s12, 3 }
   0x4   : > { %p141_p2 = pnand %p576_p0, %p140_p1 }
   0x5   : > { %p168_p3 = scmp.lt.s32.totalorder (!%p141_p2), %s745_s13, 1  ;;  %s578_s25 = sshll.u32 (!%p141_p2), %s745_s13, 1 }
   0x6   : > { %144 = sbr.rel (%p141_p2) target bundleno = 268 (0x10c), region = 28  ;;  %p174_p4 = scmp.lt.s32.totalorder (!%p141_p2), %s578_s25, 3 }
   0xb   : > { %v692_v0 = vld [vmem:[%s841_s1 + $0x44] ss:$0 sps:$4 sm:$0xff]   ;;  %vm255_vm0 = vcmask 1043456   ;;  %v717_v1 = vmov 0.0   ;;  %v693_v2 = vld [vmem:[%s841_s1 + $0x20] ss:$0 sps:$4 sm:$0xff]  }
   0xc   : > { %639 = vmatprep.subr.bf16.mxu0 %v717_v1  ;;  %653 = vmatprep.subr.bf16.mxu1 %v717_v1  ;;  %v257_v3 = vsel %vm255_vm0, %v692_v0, 0  ;;  %v330_v4 = vsel %vm255_vm0, %v693_v2, 0  ;;  %v694_v5 = vld [vmem:[%s841_s1 + $0x3c] sm:$0xff]   ;;  %vm718_vm1 = vmmov 0   ;;  %v696_v7 = vld [vmem:[%s841_s1 + $0x34] sm:$0xff]   ;;  %s776_s24 = scalar_select %p168_p3, %s745_s13, 1 }
   0xd   : > { %640 = vmatpush3.bf16.msra.mxu0 %v257_v3  ;;  %654 = vmatpush3.bf16.msra.mxu1 %v330_v4  ;;  %v695_v6 = vld [vmem:[%s841_s1 + $0x18] sm:$0xff]   ;;  %v697_v8 = vld [vmem:[%s841_s1 + $0x10] sm:$0xff]   ;;  %v699_v10 = vld [vmem:[%s841_s1 + $0x8] sm:$0xff]   ;;  %vm211_vm2 = vsmask.f32 7424  ;;  %vm251_vm3 = vcmask 588800  }
   0xe   : > { %641 = vmatprep.subr.bf16.mxu0 %v717_v1  ;;  %655 = vmatprep.subr.bf16.mxu1 %v717_v1  ;;  %s681_s27 = smul.u32 12, %s776_s24  ;;  %v698_v9 = vld [vmem:[%s841_s1 + $0x2c] sm:$0xff]   ;;  %v700_v13 = vld [vmem:[%s841_s1 + $0x24] sm:$0xff]   ;;  %v706_v25 = vld [vmem:[%s841_s1 + $0x58] sm:$0xff]   ;;  %vm385_vm4 = vcmask 1046528   ;;  %s845_s25 = smov (!%p174_p4, %s578_s25), 3 }
   0xf   : > { %649 = vmatprep.mubr.msk.bf16.mxu0 %vm718_vm1, %v717_v1  ;;  %663 = vmatprep.mubr.msk.bf16.mxu1 %vm718_vm1, %v717_v1  ;;  %v701_v17 = vld [vmem:[%s841_s1] sm:$0xff]   ;;  %v704_v18 = vld [vmem:[%s841_s1 + $0x68] ss:$0 sps:$4 sm:$0xff]   ;;  %v707_v26 = vld [vmem:[%s841_s1 + $0x50] sm:$0xff]   ;;  %s579_s26 = sshll.u32 %s845_s25, 3  ;;  %s580_s13 = sshll.u32 %s776_s24, 1 }
  0x10   : > { %s172_s7 = scalar_lea.vmem %s840_s0, %s681_s27  ;;  %v420_v22 = vsel %vm255_vm0, %v704_v18, 0  ;;  %v705_v24 = vld [vmem:[%s841_s1 + $0x60] sm:$0xff]   ;;  %v708_v27 = vld [vmem:[%s841_s1 + $0x48] sm:$0xff]   ;;  %s177_s29 = scalar_lea.vmem %s842_s2, %s579_s26 }
  0x11   : > { %642 = vmatpush3.bf16.msra.mxu0 %v694_v5  ;;  %656 = vmatpush3.bf16.msra.mxu1 %v695_v6  ;;  %v702_v11 = vld [vmem:[%s172_s7] sm:$0xff]   ;;  %v703_v12 = vld [vmem:[%s172_s7 + $0x8] ss:$0 sps:$4 sm:$0x11]   ;;  %s182_s5 = scalar_lea.vmem %s843_s3, %s580_s13 }
  0x12   : > { %643 = vmatprep.subr.bf16.mxu0 %v717_v1  ;;  %657 = vmatprep.subr.bf16.mxu1 %v717_v1  ;;  %v213_v14 = vshrl.u32 %v702_v11, 16  ;;  %v215_v15 = vshll.u32 %v702_v11, 16  ;;  %v220_v16 = vshll.u32 %v703_v12, 16  ;;  %v386_v28 = vrot.slane %v702_v11, 1 }
  0x13   : > { %v387_v29 = vrot.slane %v703_v12, 1 }
  0x14   : > { %v217_v19 = vrot.slane %v215_v15, 1  ;;  %v222_v20 = vrot.slane %v220_v16, 1 }
  0x15   : > { %644 = vmatpush3.bf16.msra.mxu0 %v696_v7  ;;  %658 = vmatpush3.bf16.msra.mxu1 %v697_v8  ;;  %v388_v30 = vsel %vm385_vm4, %v386_v28, %v387_v29 }
  0x16   : > { %645 = vmatprep.subr.bf16.mxu0 %v717_v1  ;;  %659 = vmatprep.subr.bf16.mxu1 %v717_v1  ;;  %v218_v21 = vor.u32 %v217_v19, %v213_v14 }
  0x18   : > { %v223_v23 = vsel %vm211_vm2, %v218_v21, %v222_v20 }
  0x19   : > { %646 = vmatpush3.bf16.msra.mxu0 %v698_v9  ;;  %660 = vmatpush3.bf16.msra.mxu1 %v699_v10 }
  0x1a   : > { %647 = vmatprep.subr.bf16.mxu0 %v717_v1  ;;  %661 = vmatprep.subr.bf16.mxu1 %v717_v1 }
  0x1d   : > { %648 = vmatpush3.bf16.msra.mxu0 %v700_v13  ;;  %662 = vmatpush3.bf16.msra.mxu1 %v701_v17 }
  0x1e   : > { %667 = vmatprep.subr.bf16.mxu0 %v717_v1 }
  0x20   : > { %650 = vmatmul.mubr.msk.bf16.vlgmr.msra.gmra.mxu0 %vm251_vm3, %v223_v23  ;;  %664 = vmatmul.mubr.msk.bf16.vlgmr.msra.gmra.mxu1 %vm251_vm3, %v702_v11 }
  0x21   : > { %668 = vmatpush3.bf16.msra.mxu0 %v420_v22  ;;  %677 = vmatprep.mubr.msk.bf16.mxu0 %vm718_vm1, %v717_v1 }
  0x22   : > { %669 = vmatprep.subr.bf16.mxu0 %v717_v1 }
  0x25   : > { %670 = vmatpush3.bf16.msra.mxu0 %v705_v24 }
  0x26   : > { %671 = vmatprep.subr.bf16.mxu0 %v717_v1 }
  0x29   : > { %672 = vmatpush3.bf16.msra.mxu0 %v706_v25 }
  0x2a   : > { %673 = vmatprep.subr.bf16.mxu0 %v717_v1 }
  0x2d   : > { %674 = vmatpush3.bf16.msra.mxu0 %v707_v26 }
  0x2e   : > { %675 = vmatprep.subr.bf16.mxu0 %v717_v1 }
  0x31   : > { %676 = vmatpush3.bf16.msra.mxu0 %v708_v27 }
  0x34   : > { %678 = vmatmul.mubr.msk.bf16.vlgmr.msra.gmra.mxu0 %vm251_vm3, %v388_v30 }
  0xe0   : > { %v293_v31 = vpop.f32.mrf.mxu0  ;;  %v366_v32 = vpop.f32.mrf.mxu1 }
  0xe1   : > { %v367_v39 = vadd.f32 %v366_v32, %v293_v31 }
  0xe2   : > { %v651_v33 = vpop.f32.mrf.mxu0  ;;  %v665_v34 = vpop.f32.mrf.mxu1 }
  0xe4   : > { %v296_v35 = vpop.f32.mrf.mxu0  ;;  %v369_v36 = vpop.f32.mrf.mxu1 }
  0xe5   : > { %v370_v43 = vadd.f32 %v369_v36, %v296_v35 }
  0xe6   : > { %v652_v37 = vpop.f32.mrf.mxu0  ;;  %v666_v38 = vpop.f32.mrf.mxu1 }
  0xf4   : > { %v456_v40 = vpop.f32.mrf.mxu0 }
  0xf5   : > { %v463_v41 = vadd.f32 %v456_v40, %v367_v39 }
  0xf6   : > { %v679_v42 = vpop.f32.mrf.mxu0 }
  0xf7   : > { %465 = vst [vmem:[%s177_s29] sm:$0xff] %v463_v41  ;;  %v475_v47 = vmul.f32 %v463_v41, %v463_v41 }
  0xf8   : > { %v459_v44 = vpop.f32.mrf.mxu0 }
  0xf9   : > { %v464_v45 = vadd.f32 %v459_v44, %v370_v43 }
  0xfa   : > { %v680_v46 = vpop.f32.mrf.mxu0 }
  0xfb   : > { %466 = vst [vmem:[%s177_s29 + $0x8] sm:$0xff] %v464_v45  ;;  %v467_v48 = vadd.f32 %v464_v45, %v463_v41  ;;  %v476_v49 = vmul.f32 %v464_v45, %v464_v45 }
  0xfd   : > { %v468_v50 = vrot.slane %v467_v48, 4  ;;  %v477_v51 = vadd.f32 %v476_v49, %v475_v47 }
  0xff   : > { %v469_v52 = vadd.f32 %v468_v50, %v467_v48  ;;  %v478_v53 = vrot.slane %v477_v51, 4 }
 0x101   : > { %v470_v54 = vrot.slane %v469_v52, 2  ;;  %v479_v55 = vadd.f32 %v478_v53, %v477_v51 }
 0x103   : > { %v471_v56 = vadd.f32 %v470_v54, %v469_v52  ;;  %v480_v57 = vrot.slane %v479_v55, 2 }
 0x105   : > { %v472_v58 = vrot.slane %v471_v56, 1  ;;  %v481_v59 = vadd.f32 %v480_v57, %v479_v55 }
 0x107   : > { %v473_v60 = vadd.f32 %v472_v58, %v471_v56  ;;  %v482_v61 = vrot.slane %v481_v59, 1 }
 0x109   : > { %474 = vst [vmem:[%s182_s5] sm:$0x1] %v473_v60  ;;  %v483_v62 = vadd.f32 %v482_v61, %v481_v59 }
 0x10b   : > { %484 = vst [vmem:[%s182_s5 + $0x1] sm:$0x1] %v483_v62 }
 0x10c PF: > { %s14_s12 = sadd.s32 1, %s715_s12  }
 0x10d   : > { %p11_p5 = scmp.ge.s32.totalorder %s14_s12, 4  }
 0x10f   :  { %13 = sbr.rel (!%p11_p5) target bundleno = 1 (0x1), region = 72 }

</bundles_post_ra>
